<compile_context>
chip_gen: v6e
topology: v6e:2x2x1
jax: 0.10.0
libtpu: 0.0.40
codegen_flags: <defaults>
</compile_context>

<pallas_src>
import functools

import jax
import jax.numpy as jnp
from jax.experimental import pallas as pl
from jax.experimental.pallas import tpu as pltpu


def _round_up(x: int, m: int) -> int:
    return ((x + m - 1) // m) * m


def _vmem_budget_bytes() -> int:
    """~75% of physical VMEM (headroom for Mosaic scratch / double buffers).
    128 MiB on v5e/v6e -> ~96 MiB; 64 MiB per core on v7x -> ~48 MiB."""
    try:
        cap = int(pltpu.get_tpu_info().vmem_capacity_bytes)
    except Exception:
        cap = 64 * 1024 * 1024          # conservative fallback (v7x per-core size)
    return (cap * 3) // 4


def _divisor_tile(dim_p: int, target: int) -> int:
    """Largest multiple of 8 that is <= target and divides dim_p (dim_p % 8 == 0)."""
    t = min(target, dim_p)
    t -= t % 8
    t = max(t, 8)
    while dim_p % t:
        t -= 8
    return t


# ---------------------------------------------------------------------------
# Stage 1: Y = X @ W + b  (the nn.Linear), row-tiled.  W / b blocks have
# constant index maps so they are fetched from HBM once and stay resident.
# ---------------------------------------------------------------------------
def _linear_kernel(x_ref, w_ref, b_ref, y_ref):
    y = jnp.dot(x_ref[...], w_ref[...], preferred_element_type=jnp.float32)
    y_ref[...] = (y + b_ref[...]).astype(y_ref.dtype)


def _linear(Xp, Wp, bp, out_dtype, vmem_budget, row_tile=512):
    Rp, C_in = Xp.shape
    Cp = Wp.shape[1]
    tr = _divisor_tile(Rp, row_tile)
    return pl.pallas_call(
        _linear_kernel,
        out_shape=jax.ShapeDtypeStruct((Rp, Cp), out_dtype),
        grid_spec=pltpu.PrefetchScalarGridSpec(
            num_scalar_prefetch=0,
            grid=(Rp // tr,),
            in_specs=[
                pl.BlockSpec((tr, C_in), lambda i: (i, 0)),   # X row tile
                pl.BlockSpec((C_in, Cp), lambda i: (0, 0)),   # W (= Theta^T), resident
                pl.BlockSpec((1, Cp), lambda i: (0, 0)),      # bias, resident
            ],
            out_specs=pl.BlockSpec((tr, Cp), lambda i: (i, 0)),
        ),
        compiler_params=pltpu.CompilerParams(
            dimension_semantics=("parallel",),
            vmem_limit_bytes=vmem_budget),
    )(Xp, Wp, bp)


# ---------------------------------------------------------------------------
# Generic right-matmul (optionally fused ReLU): relu?(A @ B)
#   * resident path : B held fully in VMEM (fetched once), 1-D parallel grid.
#   * K-tiled path  : (rows, K) grid; accumulate directly into the resident f32
#                     output block when possible, else into a f32 VMEM scratch.
# ---------------------------------------------------------------------------
def _mm_resident_kernel(a_ref, b_ref, o_ref, *, apply_relu):
    z = jnp.dot(a_ref[...], b_ref[...], preferred_element_type=jnp.float32)
    if apply_relu:
        z = jnp.maximum(z, 0.0)
    o_ref[...] = z.astype(o_ref.dtype)


def _mm_ktiled_inplace_kernel(a_ref, b_ref, o_ref, *, apply_relu):
    # f32 output block is resident across the k axis -> accumulate in place.
    @pl.when(pl.program_id(1) == 0)
    def _():
        o_ref[...] = jnp.zeros_like(o_ref)

    o_ref[...] += jnp.dot(a_ref[...], b_ref[...],
                          preferred_element_type=jnp.float32)

    if apply_relu:
        @pl.when(pl.program_id(1) == pl.num_programs(1) - 1)
        def _():
            o_ref[...] = jnp.maximum(o_ref[...], 0.0)


def _mm_ktiled_scratch_kernel(a_ref, b_ref, o_ref, acc_ref, *, apply_relu):
    @pl.when(pl.program_id(1) == 0)
    def _():
        acc_ref[...] = jnp.zeros_like(acc_ref)

    acc_ref[...] += jnp.dot(a_ref[...], b_ref[...],
                            preferred_element_type=jnp.float32)

    @pl.when(pl.program_id(1) == pl.num_programs(1) - 1)
    def _():
        z = acc_ref[...]
        if apply_relu:
            z = jnp.maximum(z, 0.0)
        o_ref[...] = z.astype(o_ref.dtype)


def _matmul(A, B, *, out_dtype, apply_relu, resident, tk, vmem_budget,
            row_tile=1024):
    """relu?(A @ B).  A: (Rp, Kp), B: (Kp, Cp).  Caller guarantees Rp % 8 == 0,
    Kp % 128 == 0, Cp % 128 == 0 and (not resident -> Kp % tk == 0)."""
    Rp, Kp = A.shape
    Cp = B.shape[1]
    a_it = jnp.dtype(A.dtype).itemsize
    b_it = jnp.dtype(B.dtype).itemsize
    o_it = jnp.dtype(out_dtype).itemsize

    if resident:
        # Budget the resident RHS as if it were double-buffered (it is fetched
        # once because its block index is constant, but may be allocated twice).
        fixed = 2 * Kp * Cp * b_it
        tr = _divisor_tile(Rp, row_tile)
        while tr > 8 and fixed + 2 * tr * (Kp * a_it + Cp * o_it) > vmem_budget:
            tr = _divisor_tile(Rp, tr // 2)
        cost = pl.CostEstimate(
            flops=2 * Rp * Kp * Cp, transcendentals=0,
            bytes_accessed=Rp * Kp * a_it + Kp * Cp * b_it + Rp * Cp * o_it)
        kern = functools.partial(_mm_resident_kernel, apply_relu=apply_relu)
        return pl.pallas_call(
            kern,
            out_shape=jax.ShapeDtypeStruct((Rp, Cp), out_dtype),
            grid_spec=pltpu.PrefetchScalarGridSpec(
                num_scalar_prefetch=0,
                grid=(Rp // tr,),
                in_specs=[
                    pl.BlockSpec((tr, Kp), lambda i: (i, 0)),
                    pl.BlockSpec((Kp, Cp), lambda i: (0, 0)),   # resident RHS
                ],
                out_specs=pl.BlockSpec((tr, Cp), lambda i: (i, 0)),
            ),
            compiler_params=pltpu.CompilerParams(
                dimension_semantics=("parallel",),
                vmem_limit_bytes=vmem_budget),
            cost_estimate=cost,
        )(A, B)

    # K-tiled fallback.
    in_place = jnp.dtype(out_dtype) == jnp.dtype(jnp.float32)
    tr = _divisor_tile(Rp, row_tile)

    def _need(t):
        n = 2 * t * tk * a_it + 2 * tk * Cp * b_it + 2 * t * Cp * o_it
        if not in_place:
            n += t * Cp * 4
        return n

    while tr > 8 and _need(tr) > vmem_budget:
        tr = _divisor_tile(Rp, tr // 2)

    cost = pl.CostEstimate(
        flops=2 * Rp * Kp * Cp, transcendentals=0,
        bytes_accessed=Rp * Kp * a_it + (Rp // tr) * Kp * Cp * b_it
        + Rp * Cp * o_it)
    if in_place:
        kern = functools.partial(_mm_ktiled_inplace_kernel, apply_relu=apply_relu)
        scratch = []
    else:
        kern = functools.partial(_mm_ktiled_scratch_kernel, apply_relu=apply_relu)
        scratch = [pltpu.VMEM((tr, Cp), jnp.float32)]
    return pl.pallas_call(
        kern,
        out_shape=jax.ShapeDtypeStruct((Rp, Cp), out_dtype),
        grid_spec=pltpu.PrefetchScalarGridSpec(
            num_scalar_prefetch=0,
            grid=(Rp // tr, Kp // tk),
            in_specs=[
                pl.BlockSpec((tr, tk), lambda i, k: (i, k)),
                pl.BlockSpec((tk, Cp), lambda i, k: (k, 0)),
            ],
            out_specs=pl.BlockSpec((tr, Cp), lambda i, k: (i, 0)),
            scratch_shapes=scratch,
        ),
        compiler_params=pltpu.CompilerParams(
            dimension_semantics=("parallel", "arbitrary"),
            vmem_limit_bytes=vmem_budget),
        cost_estimate=cost,
    )(A, B)


# ---------------------------------------------------------------------------
# HGNNConv forward.
# ---------------------------------------------------------------------------
def hgnn_conv(X, H, w_e, W, b, *, is_last=False, compute_dtype=jnp.bfloat16,
              row_tile=1024, k_tile=2048, linear_row_tile=512):
    """Pallas implementation of HGNNConv.forward (use_bn=False, eval mode).

    X   : (N, C_in)   vertex features
    H   : (N, M)      dense 0/1 incidence matrix
    w_e : (M,)        hyperedge weights
    W   : (C_in, C_out)  = Theta^T (nn.Linear weight, transposed)
    b   : (C_out,) or (1, C_out) bias
    Set compute_dtype=jnp.float32 for a full-precision fallback.
    """
    N, C_in = X.shape
    M = H.shape[1]
    C_out = W.shape[1]
    out_dtype = X.dtype
    b = jnp.reshape(b, (1, C_out))          # accept (C_out,) or (1, C_out)

    budget = _vmem_budget_bytes()
    c_it = jnp.dtype(compute_dtype).itemsize
    k_tile = max(128, (k_tile // 128) * 128)

    Cp = _round_up(C_out, 128)              # lane-dense output channels

    # --- plan the two smoothing matmuls ------------------------------------
    # stage 2a: T (M, Cp) = B (M, N) @ Y (N, Cp)      contraction over vertices
    # stage 2b: Z (N, Cp) = A (N, M) @ T (M, Cp)      contraction over hyperedges
    # RHS-resident fast path if the whole RHS fits ~half the VMEM budget
    # (the other half is left for the double-buffered LHS / output tiles).
    res_a = 2 * _round_up(N, 128) * Cp * c_it <= budget // 2
    res_b = 2 * _round_up(M, 128) * Cp * c_it <= budget // 2
    tk_a = 128 if res_a else min(k_tile, _round_up(N, 128))
    tk_b = 128 if res_b else min(k_tile, _round_up(M, 128))

    # N is a contraction dim in 2a and a row dim in 2b (and vice versa for M);
    # one padded size per dim satisfies both since tk_* is a multiple of 128.
    Np = _round_up(N, tk_a)
    Mp = _round_up(M, tk_b)

    # --- hypergraph smoothing factors, emitted directly in compute dtype at
    #     padded, tile-aligned shapes (the dense (N,N) L is never formed) -----
    Hf = H.astype(jnp.float32)
    w_e = w_e.astype(jnp.float32)
    d_v = Hf @ w_e                          # weighted vertex degree  (N,)
    d_e = jnp.sum(Hf, axis=0)               # hyperedge degree        (M,)
    inv_sqrt_dv = jnp.where(d_v > 0, jax.lax.rsqrt(d_v), 0.0)
    inv_de = jnp.where(d_e > 0, 1.0 / d_e, 0.0)

    Hp = jnp.pad(Hf, ((0, Np - N), (0, Mp - M)))
    dvp = jnp.pad(inv_sqrt_dv, (0, Np - N))
    wde = jnp.pad(w_e * inv_de, (0, Mp - M))
    #   A = Dv^{-1/2} H We De^{-1}  (Np, Mp)      Bm = H^T Dv^{-1/2}  (Mp, Np)
    A = ((dvp[:, None] * Hp) * wde[None, :]).astype(compute_dtype)
    Bm = (Hp.T * dvp[None, :]).astype(compute_dtype)

    # --- stage 1: Y = X @ W + b  (rows padded to Np to line up with Bm cols) -
    Xp = jnp.pad(X, ((0, Np - N), (0, 0)))
    Wp = jnp.pad(W, ((0, 0), (0, Cp - C_out)))
    bp = jnp.pad(b, ((0, 0), (0, Cp - C_out)))
    # NOTE: padded Y rows equal the bias, but the matching Bm COLUMNS are
    # exactly zero, so they contribute nothing (keep pad-L-not-Y invariant).
    Y = _linear(Xp, Wp, bp, compute_dtype, budget, row_tile=linear_row_tile)

    # --- stage 2a: T = Bm @ Y ------------------------------------------------
    T = _matmul(Bm, Y, out_dtype=compute_dtype, apply_relu=False,
                resident=res_a, tk=tk_a, vmem_budget=budget, row_tile=row_tile)

    # --- stage 2b: Z = relu?(A @ T) -------------------------------------------
    # TODO(synk): nn.Dropout is identity in eval mode; training-mode stochastic
    # dropout (pltpu.prng_*) is not implemented.
    Z = _matmul(A, T, out_dtype=out_dtype, apply_relu=not is_last,
                resident=res_b, tk=tk_b, vmem_budget=budget, row_tile=row_tile)

    return Z[:N, :C_out]


if __name__ == "__main__":
    # Small shapes consistent with the module: N vertices, M hyperedges,
    # C_in input channels, C_out output channels.
    N, M, C_in, C_out = 64, 32, 32, 16

    key = jax.random.PRNGKey(0)
    k_x, k_h, k_w, k_b = jax.random.split(key, 4)

    # Vertex features.
    X = jax.random.normal(k_x, (N, C_in), dtype=jnp.float32)

    # Random binary incidence matrix; every vertex in >= 1 edge, every edge
    # has >= 1 vertex.
    H = (jax.random.uniform(k_h, (N, M)) < 0.25).astype(jnp.float32)
    H = H.at[jnp.arange(N), jnp.arange(N) % M].set(1.0)
    w_e = jnp.ones((M,), dtype=jnp.float32)   # default unit hyperedge weights

    # nn.Linear(in_channels, out_channels, bias=True) params (Theta^T, bias).
    bound = 1.0 / jnp.sqrt(jnp.float32(C_in))
    W = jax.random.uniform(k_w, (C_in, C_out), minval=-bound, maxval=bound,
                           dtype=jnp.float32)
    b = jax.random.uniform(k_b, (C_out,), minval=-bound, maxval=bound,
                           dtype=jnp.float32)

    out = hgnn_conv(X, H, w_e, W, b, is_last=False)
    out = jax.block_until_ready(out)

    # Pure-JAX f32 dense reference (validates both the L = A@B factorization
    # and the kernels); loose tolerance because factors / Y / T stream as bf16.
    d_v = H @ w_e
    d_e = jnp.sum(H, axis=0)
    inv_sqrt_dv = jnp.where(d_v > 0, 1.0 / jnp.sqrt(d_v), 0.0)
    inv_de = jnp.where(d_e > 0, 1.0 / d_e, 0.0)
    L = (inv_sqrt_dv[:, None] * H * (w_e * inv_de)[None, :]) @ (H.T * inv_sqrt_dv[None, :])
    ref = jnp.maximum(L @ (X @ W + b[None, :]), 0.0)

    assert out.shape == (N, C_out)
    assert jnp.allclose(out, ref, atol=5e-2, rtol=5e-2), \
        float(jnp.max(jnp.abs(out - ref)))

    print("KERNEL_OK")
</pallas_src>

<mosaic_0001>
module attributes {stable_mosaic.version = 11 : i64} {
  func.func @_linear_kernel(%arg0: i32, %arg1: memref<128x32xf32, #tpu.memory_space<vmem>>, %arg2: memref<32x128xf32, #tpu.memory_space<vmem>>, %arg3: memref<1x128xf32, #tpu.memory_space<vmem>>, %arg4: memref<128x128xbf16, #tpu.memory_space<vmem>>) attributes {dimension_semantics = [#tpu.dimension_semantics<parallel>], iteration_bounds = array<i64: 1>, scalar_prefetch = 0 : i64, scratch_operands = 0 : i64, tpu.core_type = #tpu.core_type<tc>, window_params = [{transform_indices = @transform_0, window_bounds = array<i64: 128, 32>}, {pipeline_mode = #tpu.pipeline_mode<synchronous>, transform_indices = @transform_1, window_bounds = array<i64: 32, 128>}, {pipeline_mode = #tpu.pipeline_mode<synchronous>, transform_indices = @transform_2, window_bounds = array<i64: 1, 128>}, {transform_indices = @transform_3, window_bounds = array<i64: 128, 128>}]} {
    %c0 = arith.constant 0 : index
    %c0_0 = arith.constant 0 : index
    %0 = vector.load %arg1[%c0, %c0_0] : memref<128x32xf32, #tpu.memory_space<vmem>>, vector<128x32xf32>
    %c0_1 = arith.constant 0 : index
    %c0_2 = arith.constant 0 : index
    %1 = vector.load %arg2[%c0_1, %c0_2] : memref<32x128xf32, #tpu.memory_space<vmem>>, vector<32x128xf32>
    %cst = arith.constant dense<0.000000e+00> : vector<128x128xf32>
    %2 = tpu.matmul %0, %1, %cst {dimension_numbers = #tpu.dot_dimension_numbers<[1], [0], [0], [1], [0, 0, 1, 1], [], []>} : vector<128x32xf32>, vector<32x128xf32>, vector<128x128xf32> -> vector<128x128xf32>
    %c0_3 = arith.constant 0 : index
    %c0_4 = arith.constant 0 : index
    %3 = vector.load %arg3[%c0_3, %c0_4] : memref<1x128xf32, #tpu.memory_space<vmem>>, vector<1x128xf32>
    %4 = vector.broadcast %3 : vector<1x128xf32> to vector<128x128xf32>
    %5 = arith.addf %2, %4 : vector<128x128xf32>
    %6 = arith.truncf %5 : vector<128x128xf32> to vector<128x128xbf16>
    %c0_5 = arith.constant 0 : index
    %c0_6 = arith.constant 0 : index
    %7 = vector.load %arg4[%c0_5, %c0_6] : memref<128x128xbf16, #tpu.memory_space<vmem>>, vector<128x128xbf16>
    tpu.vector_store %arg4[%c0_5, %c0_6], %6 {strides = array<i32>} : memref<128x128xbf16, #tpu.memory_space<vmem>>, vector<128x128xbf16>,
    return
  }
  func.func @transform_0(%arg0: i32) -> (i32, i32) {
    %c0_i32 = arith.constant 0 : i32
    %c0_i32_0 = arith.constant 0 : i32
    return %arg0, %c0_i32 : i32, i32
  }
  func.func @transform_1(%arg0: i32) -> (i32, i32) {
    %c0_i32 = arith.constant 0 : i32
    %c0_i32_0 = arith.constant 0 : i32
    %c0_i32_1 = arith.constant 0 : i32
    return %c0_i32, %c0_i32_0 : i32, i32
  }
  func.func @transform_2(%arg0: i32) -> (i32, i32) {
    %c0_i32 = arith.constant 0 : i32
    %c0_i32_0 = arith.constant 0 : i32
    %c0_i32_1 = arith.constant 0 : i32
    return %c0_i32, %c0_i32_0 : i32, i32
  }
  func.func @transform_3(%arg0: i32) -> (i32, i32) {
    %c0_i32 = arith.constant 0 : i32
    %c0_i32_0 = arith.constant 0 : i32
    return %arg0, %c0_i32 : i32, i32
  }
}

</mosaic_0001>

<bundles_post_ra>
// kernel: tpu_custom_call.1
= control target key start
LH: loop header
LB: loop body
LE: loop exit
PB: predicated region body
PF: predicated region fallthrough
CT: control target
= control target key end

     0   :  { %vm42_vm0 = vcmask 261120   ;;  %s618_s0 = inlined_call_operand.vmem [shape: f32[128,32], index: 0, kind: input, shape index: {}]   ;;  %s619_s1 = inlined_call_operand.vmem [shape: f32[32,128], index: 1, kind: input, shape index: {}]   ;;  %s620_s2 = inlined_call_operand.vmem [shape: f32[1,128], index: 2, kind: input, shape index: {}]   ;;  %s621_s3 = inlined_call_operand.hbm [shape: bf16[128,128], index: 3, kind: output, shape index: {}]  }
   0x1   :  { %v34_v0 = vld [vmem:[%s619_s1 + $0x18] sm:$0xff]  ;;  %v33_v1 = vld [vmem:[%s619_s1 + $0x10] sm:$0xff]  ;;  %v32_v2 = vld [vmem:[%s619_s1 + $0x8] sm:$0xff] }
   0x2   :  { %448 = vmatprep.subr.mxu0 %v34_v0  ;;  %480 = vmatprep.subr.mxu1 %v34_v0  ;;  %v31_v3 = vld [vmem:[%s619_s1] sm:$0xff] }
   0x3   :  { %449 = vmatpush3.msra.mxu0 %v34_v0  ;;  %484 = vmatpush3.msra.mxu1 %v34_v0  ;;  %v15_v4 = vld [vmem:[%s618_s0] sm:$0xff] }
   0x4   :  { %450 = vmatprep.subr.mxu0 %v33_v1  ;;  %481 = vmatprep.subr.mxu1 %v33_v1  ;;  %v23_v5 = vld [vmem:[%s618_s0 + $0x40] sm:$0xff] }
   0x5   :  { %451 = vmatpush3.msra.mxu0 %v33_v1  ;;  %485 = vmatpush3.msra.mxu1 %v33_v1 }
   0x6   :  { %452 = vmatprep.subr.mxu0 %v32_v2  ;;  %482 = vmatprep.subr.mxu1 %v32_v2 }
   0x7   :  { %453 = vmatpush3.msra.mxu0 %v32_v2  ;;  %486 = vmatpush3.msra.mxu1 %v32_v2 }
   0x8   :  { %8 = vsyncpa [#allocation3], 0  ;;  %454 = vmatprep.subr.mxu0 %v31_v3  ;;  %483 = vmatprep.subr.mxu1 %v31_v3  ;;  %v16_v6 = vld [vmem:[%s618_s0 + $0x8] sm:$0xff]  ;;  %v17_v8 = vld [vmem:[%s618_s0 + $0x10] sm:$0xff] }
   0x9   :  { %v24_v7 = vld [vmem:[%s618_s0 + $0x48] sm:$0xff]  ;;  %455 = vmatpush3.msra.mxu0 %v31_v3  ;;  %487 = vmatpush3.msra.mxu1 %v31_v3  ;;  %v25_v9 = vld [vmem:[%s618_s0 + $0x50] sm:$0xff]  ;;  %v18_v10 = vld [vmem:[%s618_s0 + $0x18] sm:$0xff] }
   0xa   :  { %456 = vmatprep.mubr.msk.f32.mxu0 %vm42_vm0, %v15_v4  ;;  %468 = vmatprep.mubr.msk.f32.mxu1 %vm42_vm0, %v23_v5  ;;  %v26_v11 = vld [vmem:[%s618_s0 + $0x58] sm:$0xff]  ;;  %v19_v12 = vld [vmem:[%s618_s0 + $0x20] sm:$0xff]  ;;  %v20_v14 = vld [vmem:[%s618_s0 + $0x28] sm:$0xff] }
   0xb   :  { %457 = vmatmul.mubr.msk.f32.vlgmr.msra.gmra.mxu0 %vm42_vm0, %v16_v6  ;;  %469 = vmatmul.mubr.msk.f32.vlgmr.msra.gmra.mxu1 %vm42_vm0, %v24_v7  ;;  %v27_v13 = vld [vmem:[%s618_s0 + $0x60] sm:$0xff]  ;;  %v28_v15 = vld [vmem:[%s618_s0 + $0x68] sm:$0xff]  ;;  %v21_v16 = vld [vmem:[%s618_s0 + $0x30] sm:$0xff] }
   0xc   :  { %459 = vmatprep.mubr.msk.f32.mxu0 %vm42_vm0, %v17_v8  ;;  %471 = vmatprep.mubr.msk.f32.mxu1 %vm42_vm0, %v25_v9  ;;  %v29_v17 = vld [vmem:[%s618_s0 + $0x70] sm:$0xff]  ;;  %v22_v18 = vld [vmem:[%s618_s0 + $0x38] sm:$0xff]  ;;  %v332_v21 = vld [vmem:[%s620_s2] ss:$0 sm:$0xff] }
   0xd   :  { %v30_v19 = vld [vmem:[%s618_s0 + $0x78] sm:$0xff]  ;;  %s513_s0 = smov [#allocation2]  }
   0xe   :  { %s321_s2 = sshll.u32 %s513_s0, 4  ;;  %s322_s2 = int_to_ptr.vmem [resolvable:$true] %s321_s2 }
   0xf   :  { %460 = vmatmul.mubr.msk.f32.gmra.mxu0 %vm42_vm0, %v18_v10  ;;  %472 = vmatmul.mubr.msk.f32.gmra.mxu1 %vm42_vm0, %v26_v11  ;;  %s491_s1 = scalar_lea.vmem %s322_s2, 1024  ;;  %p496_p1 = scmp.lt.s32.totalorder %s322_s2, %s322_s2 }
  0x10   :  { %462 = vmatprep.mubr.msk.f32.mxu0 %vm42_vm0, %v19_v12  ;;  %474 = vmatprep.mubr.msk.f32.mxu1 %vm42_vm0, %v27_v13  ;;  %p492_p0 = scmp.ne.s32.totalorder %s322_s2, %s491_s1  ;;  %p497_p2 = scmp.lt.s32.totalorder %s491_s1, %s491_s1 }
  0x12   :  { %p498_p3 = por %p497_p2, %p496_p1 }
  0x13   :  { %463 = vmatmul.mubr.msk.f32.gmra.mxu0 %vm42_vm0, %v20_v14  ;;  %475 = vmatmul.mubr.msk.f32.gmra.mxu1 %vm42_vm0, %v28_v15 }
  0x14   :  { %465 = vmatprep.mubr.msk.f32.mxu0 %vm42_vm0, %v21_v16  ;;  %477 = vmatprep.mubr.msk.f32.mxu1 %vm42_vm0, %v29_v17  ;;  %p499_p4 = pnand %p498_p3, %p492_p0 }
  0x17   :  { %466 = vmatmul.mubr.msk.f32.gmra.mxu0 %vm42_vm0, %v22_v18  ;;  %478 = vmatmul.mubr.msk.f32.gmra.mxu1 %vm42_vm0, %v30_v19 }
  0xcb   :  { %v458_v20 = vpop.f32.mrf.mxu0  ;;  %v470_v22 = vpop.f32.mrf.mxu1 }
  0xcc   :  { %v163_v25 = vadd.f32 %v458_v20, %v332_v21  ;;  %v203_v26 = vadd.f32 %v470_v22, %v332_v21 }
  0xcd   :  { %v157_v23 = vpop.f32.mrf.mxu0  ;;  %v197_v24 = vpop.f32.mrf.mxu1 }
  0xce   :  { %v158_v27 = vadd.f32 %v332_v21, %v157_v23  ;;  %v198_v28 = vadd.f32 %v332_v21, %v197_v24 }
  0xcf   :  { %v461_v29 = vpop.f32.mrf.mxu0  ;;  %v473_v30 = vpop.f32.mrf.mxu1 }
  0xd0   :  { %v384_v31 = vpack.c.bf16 %v163_v25, %v158_v27  ;;  %v404_v32 = vpack.c.bf16 %v203_v26, %v198_v28  ;;  %v173_v35 = vadd.f32 %v461_v29, %v332_v21  ;;  %v213_v36 = vadd.f32 %v473_v30, %v332_v21 }
  0xd1   :  { %v167_v33 = vpop.f32.mrf.mxu0  ;;  %v207_v34 = vpop.f32.mrf.mxu1 }
  0xd2   :  { %385 = vst [vmem:[#allocation2] sm:$0xff] %v384_v31   ;;  %424 = vst [vmem:[#allocation2 + $0x20] sm:$0xff] %v404_v32   ;;  %v168_v37 = vadd.f32 %v332_v21, %v167_v33  ;;  %v208_v38 = vadd.f32 %v332_v21, %v207_v34 }
  0xd3   :  { %v464_v39 = vpop.f32.mrf.mxu0  ;;  %v476_v40 = vpop.f32.mrf.mxu1 }
  0xd4   :  { %v389_v41 = vpack.c.bf16 %v173_v35, %v168_v37  ;;  %v409_v42 = vpack.c.bf16 %v213_v36, %v208_v38  ;;  %v183_v45 = vadd.f32 %v464_v39, %v332_v21  ;;  %v223_v46 = vadd.f32 %v476_v40, %v332_v21 }
  0xd5   :  { %v177_v43 = vpop.f32.mrf.mxu0  ;;  %v217_v44 = vpop.f32.mrf.mxu1 }
  0xd6   :  { %421 = vst [vmem:[#allocation2 + $0x8] sm:$0xff] %v389_v41   ;;  %425 = vst [vmem:[#allocation2 + $0x28] sm:$0xff] %v409_v42   ;;  %v178_v47 = vadd.f32 %v332_v21, %v177_v43  ;;  %v218_v48 = vadd.f32 %v332_v21, %v217_v44 }
  0xd7   :  { %v467_v49 = vpop.f32.mrf.mxu0  ;;  %v479_v50 = vpop.f32.mrf.mxu1 }
  0xd8   :  { %v394_v51 = vpack.c.bf16 %v183_v45, %v178_v47  ;;  %v414_v52 = vpack.c.bf16 %v223_v46, %v218_v48  ;;  %v193_v55 = vadd.f32 %v467_v49, %v332_v21  ;;  %v233_v56 = vadd.f32 %v479_v50, %v332_v21 }
  0xd9   :  { %v187_v53 = vpop.f32.mrf.mxu0  ;;  %v227_v54 = vpop.f32.mrf.mxu1 }
  0xda   :  { %422 = vst [vmem:[#allocation2 + $0x10] sm:$0xff] %v394_v51   ;;  %426 = vst [vmem:[#allocation2 + $0x30] sm:$0xff] %v414_v52   ;;  %v188_v57 = vadd.f32 %v332_v21, %v187_v53  ;;  %v228_v58 = vadd.f32 %v332_v21, %v227_v54 }
  0xdc   :  { %v399_v59 = vpack.c.bf16 %v193_v55, %v188_v57  ;;  %v419_v60 = vpack.c.bf16 %v233_v56, %v228_v58 }
  0xde   :  { %423 = vst [vmem:[#allocation2 + $0x18] sm:$0xff] %v399_v59   ;;  %427 = vst [vmem:[#allocation2 + $0x38] sm:$0xff] %v419_v60  }
  0xdf   :  { %502 = shalt.err (!%p499_p4)
}
  0xe0   :  { %s514_s26 = smov 64   ;;  %s515_s27 = smov 4  }
  0xe1   :  { %327 = dma.vmem_to_hbm [thread:$0]  %s322_s2, 1024, %s621_s3, [#allocation3], %s514_s26, %s514_s26, %s515_s27  }
  0xe2   :  { %511 = dma.done.wait [#allocation3], 1024  }
  0xe3   :  { %512 = vsyncadd [#allocation3], 4294966272 }
  0xe4   :  { %331 = vsyncpa [#allocation3], 1 }

</bundles_post_ra>
